<compile_context>
chip_gen: v7x
topology: tpu7x:2x2x1
jax: 0.10.0
libtpu: 0.0.40
codegen_flags: <defaults>
</compile_context>

<pallas_src>
import functools

import jax
import jax.numpy as jnp
from jax import lax
from jax.experimental import pallas as pl
from jax.experimental.pallas import tpu as pltpu


def mha_kernel(xq_ref, xk_ref, xv_ref,
               w_qkv_ref, b_qkv_ref, w_o_ref, b_o_ref,
               out_ref, ctx_ref, *, n_head, d_k, bb, n):
    d = n_head * d_k
    rows = bb * n

    # One bf16 cast per activation block; MXU is bf16-native on all target chips.
    xq = xq_ref[...].astype(jnp.bfloat16)
    xk = xk_ref[...].astype(jnp.bfloat16)
    xv = xv_ref[...].astype(jnp.bfloat16)

    # Full-depth (rows, D) @ (D, D) projections, f32 accumulation, f32 bias add.
    # 1/sqrt(d_k) is already folded into w_qkv[0] / b_qkv[0] on the host.
    q = jnp.dot(xq, w_qkv_ref[0], preferred_element_type=jnp.float32) + b_qkv_ref[0]
    k = jnp.dot(xk, w_qkv_ref[1], preferred_element_type=jnp.float32) + b_qkv_ref[1]
    v = jnp.dot(xv, w_qkv_ref[2], preferred_element_type=jnp.float32) + b_qkv_ref[2]

    # (rows, D) -> (bb, n, D): leading-dim split only (tile-aligned, no lane shuffle).
    q3 = q.reshape(bb, n, d)
    k3 = k.reshape(bb, n, d)
    v3 = v.reshape(bb, n, d)

    # Per-head attention.  Each head's context goes straight into the (rows, D) VMEM
    # scratch at its lane offset, so the output projection below is a single
    # full-contraction (rows, D) @ (D, D) matmul instead of n_head K=d_k matmuls.
    for h in range(n_head):
        sl = slice(h * d_k, (h + 1) * d_k)
        qh = q3[:, :, sl].astype(jnp.bfloat16)        # (bb, n, d_k)
        kh = k3[:, :, sl].astype(jnp.bfloat16)
        vh = v3[:, :, sl].astype(jnp.bfloat16)

        # qh . kh^T without materializing a transpose; f32 accumulation on the MXU.
        s = lax.dot_general(qh, kh, (((2,), (2,)), ((0,), (0,))),
                            preferred_element_type=jnp.float32)      # (bb, n, n)
        s = s - jnp.max(s, axis=-1, keepdims=True)
        e = jnp.exp(s)
        # Exact reciprocal over the tiny (bb, n, 1) row sums, then a VPU multiply.
        p = e * pl.reciprocal(jnp.sum(e, axis=-1, keepdims=True), approx=False)
        p = p.astype(jnp.bfloat16)                    # bf16 probs -> native MXU rate

        ctx = lax.dot_general(p, vh, (((2,), (1,)), ((0,), (0,))),
                              preferred_element_type=jnp.float32)    # (bb, n, d_k)
        ctx_ref[:, sl] = ctx.reshape(rows, d_k).astype(jnp.bfloat16)

    # Single full-depth output projection.
    y = jnp.dot(ctx_ref[...], w_o_ref[...], preferred_element_type=jnp.float32)
    y = y + b_o_ref[...]
    # TODO(synk): dropout is identity here (inference semantics).
    out_ref[...] = y.astype(out_ref.dtype)


def pack_mha_params(params, *, n_head):
    """One-time host-side packing: stack QKV weights, cast weights to bf16 and fold
    the 1/sqrt(d_k) attention scale into w_q / b_q."""
    d_model = params["wq"].shape[0]
    d_k = d_model // n_head
    scale = 1.0 / (d_k ** 0.5)
    return {
        "w_qkv": jnp.stack([params["wq"] * scale, params["wk"], params["wv"]],
                           axis=0).astype(jnp.bfloat16),          # (3, D, D)
        "b_qkv": jnp.stack([params["bq"] * scale, params["bk"], params["bv"]],
                           axis=0).astype(jnp.float32),           # (3, 1, D)
        "w_o": params["wo"].astype(jnp.bfloat16),                 # (D, D)
        "b_o": params["bo"].astype(jnp.float32),                  # (1, D)
    }


def _pick_batch_block(batch, seq):
    """Grow bb toward >=256 MXU rows per grid step while keeping >=2 grid steps
    (v7x has 2 TensorCores) and legal (8, 128) tiling of partial blocks."""
    valid = [bb for bb in range(1, batch + 1)
             if batch % bb == 0
             and (batch // bb >= 2 or batch < 2)
             and (batch // bb == 1 or (bb * seq) % 8 == 0)]
    if not valid:
        return batch                       # fall back to one full-batch block
    for bb in valid:
        if bb * seq >= 256:
            return bb
    return valid[-1]


def multi_headed_attention(query, key, value, packed_params, *, n_head, batch_block=None):
    """query/key/value: (B, N, D).  packed_params: output of pack_mha_params."""
    B, N, D = query.shape
    assert key.shape == (B, N, D) and value.shape == (B, N, D)
    assert D % n_head == 0, "d_model must be divisible by n_head"
    d_k = D // n_head

    bb = batch_block if batch_block is not None else _pick_batch_block(B, N)
    assert B % bb == 0, "batch_block must divide the batch size"
    rows = bb * N
    grid = B // bb
    if grid > 1:
        assert rows % 8 == 0, "batch_block * N must be a multiple of 8 when tiling the batch"

    # Flatten (B, N, D) -> (B*N, D) outside the kernel (free leading-dim merge) so every
    # in-kernel matmul / output store is 2-D and lane-dense with no per-step reshape copies.
    q2 = query.reshape(B * N, D)
    k2 = key.reshape(B * N, D)
    v2 = value.reshape(B * N, D)

    kern = functools.partial(mha_kernel, n_head=n_head, d_k=d_k, bb=bb, n=N)

    x_spec = pl.BlockSpec((rows, D), lambda i: (i, 0))
    # Grid-invariant weights/biases: a second pipeline buffer is pure VMEM waste for a
    # constant index_map, so ask for single buffering (headroom on v7x's 64 MiB VMEM).
    w_qkv_spec = pl.BlockSpec((3, D, D), lambda i: (0, 0, 0), pipeline_mode=pl.Buffered(1))
    b_qkv_spec = pl.BlockSpec((3, 1, D), lambda i: (0, 0, 0), pipeline_mode=pl.Buffered(1))
    w_o_spec = pl.BlockSpec((D, D), lambda i: (0, 0), pipeline_mode=pl.Buffered(1))
    b_o_spec = pl.BlockSpec((1, D), lambda i: (0, 0), pipeline_mode=pl.Buffered(1))

    # Rough per-step VMEM budget; clamp to [32 MiB, 64 MiB] so it is legal on v5e
    # (16 MiB default scoped limit) and never exceeds v7x's 64 MiB physical VMEM.
    est = (4 * D * D * 2 + 4 * D * 4            # bf16 weights + f32 biases
           + 8 * rows * D * 4                   # double-buffered f32 in/out blocks
           + 4 * rows * D * 4 + rows * D * 2    # q/k/v/y + bf16 ctx scratch
           + 2 * bb * N * N * 4)                # scores / probs working set
    vmem_limit = int(min(max(2 * est, 32 << 20), 64 << 20))

    out2 = pl.pallas_call(
        kern,
        out_shape=jax.ShapeDtypeStruct((B * N, D), query.dtype),
        grid_spec=pltpu.PrefetchScalarGridSpec(
            num_scalar_prefetch=0,
            grid=(grid,),
            in_specs=[x_spec, x_spec, x_spec,
                      w_qkv_spec, b_qkv_spec, w_o_spec, b_o_spec],
            out_specs=x_spec,
            scratch_shapes=[pltpu.VMEM((rows, D), jnp.bfloat16)],   # per-head ctx concat
        ),
        compiler_params=pltpu.CompilerParams(
            dimension_semantics=("parallel",),
            vmem_limit_bytes=vmem_limit),
    )(q2, k2, v2,
      packed_params["w_qkv"], packed_params["b_qkv"],
      packed_params["w_o"], packed_params["b_o"])
    return out2.reshape(B, N, D)


def reference_mha(query, key, value, params, *, n_head):
    """Pure-JAX f32 reference mirroring the PyTorch forward (eval mode)."""
    B, N, D = query.shape
    d_k = D // n_head
    q = query @ params["wq"] + params["bq"]
    k = key @ params["wk"] + params["bk"]
    v = value @ params["wv"] + params["bv"]

    def split(x):  # b n (h d) -> b h n d
        return x.reshape(B, N, n_head, d_k).transpose(0, 2, 1, 3)

    q, k, v = split(q), split(k), split(v)
    scores = jnp.einsum('bhqd,bhkd->bhqk', q, k) / (d_k ** 0.5)
    attn = jax.nn.softmax(scores, axis=-1)
    out = jnp.einsum('bhqk,bhkd->bhqd', attn, v)
    out = out.transpose(0, 2, 1, 3).reshape(B, N, D)  # b h q d -> b q (h d)
    return out @ params["wo"] + params["bo"]


if __name__ == "__main__":
    B, N, D_MODEL, N_HEAD = 2, 8, 32, 4

    key = jax.random.PRNGKey(0)
    ks = jax.random.split(key, 11)
    scale = 0.1
    params = {
        "wq": scale * jax.random.normal(ks[0], (D_MODEL, D_MODEL), jnp.float32),
        "bq": scale * jax.random.normal(ks[1], (1, D_MODEL), jnp.float32),
        "wk": scale * jax.random.normal(ks[2], (D_MODEL, D_MODEL), jnp.float32),
        "bk": scale * jax.random.normal(ks[3], (1, D_MODEL), jnp.float32),
        "wv": scale * jax.random.normal(ks[4], (D_MODEL, D_MODEL), jnp.float32),
        "bv": scale * jax.random.normal(ks[5], (1, D_MODEL), jnp.float32),
        "wo": scale * jax.random.normal(ks[6], (D_MODEL, D_MODEL), jnp.float32),
        "bo": scale * jax.random.normal(ks[7], (1, D_MODEL), jnp.float32),
    }
    packed = pack_mha_params(params, n_head=N_HEAD)   # one-time host-side packing

    query = jax.random.normal(ks[8], (B, N, D_MODEL), jnp.float32)
    key_in = jax.random.normal(ks[9], (B, N, D_MODEL), jnp.float32)
    value = jax.random.normal(ks[10], (B, N, D_MODEL), jnp.float32)

    out = multi_headed_attention(query, key_in, value, packed, n_head=N_HEAD)
    out = jax.block_until_ready(out)

    ref = reference_mha(query, key_in, value, params, n_head=N_HEAD)
    assert out.shape == (B, N, D_MODEL)
    # bf16 weights / probs on the MXU introduce ~1e-2-level absolute error vs the
    # full-f32 reference; accumulation itself stays in f32.
    assert jnp.allclose(out, ref, atol=3e-2, rtol=3e-2), "mismatch vs JAX reference"

    print("KERNEL_OK")
</pallas_src>

<mosaic_0001>
module attributes {stable_mosaic.version = 11 : i64} {
  func.func @mha_kernel(%arg0: i32, %arg1: memref<8x32xf32, #tpu.memory_space<vmem>>, %arg2: memref<8x32xf32, #tpu.memory_space<vmem>>, %arg3: memref<8x32xf32, #tpu.memory_space<vmem>>, %arg4: memref<3x32x32xbf16, #tpu.memory_space<vmem>>, %arg5: memref<3x1x32xf32, #tpu.memory_space<vmem>>, %arg6: memref<32x32xbf16, #tpu.memory_space<vmem>>, %arg7: memref<1x32xf32, #tpu.memory_space<vmem>>, %arg8: memref<8x32xf32, #tpu.memory_space<vmem>>, %arg9: memref<8x32xbf16, #tpu.memory_space<vmem>>) attributes {dimension_semantics = [#tpu.dimension_semantics<parallel>], iteration_bounds = array<i64: 2>, scalar_prefetch = 0 : i64, scratch_operands = 1 : i64, tpu.core_type = #tpu.core_type<tc>, window_params = [{transform_indices = @transform_0, window_bounds = array<i64: 8, 32>}, {transform_indices = @transform_1, window_bounds = array<i64: 8, 32>}, {transform_indices = @transform_2, window_bounds = array<i64: 8, 32>}, {pipeline_mode = #tpu.pipeline_mode<synchronous>, transform_indices = @transform_3, window_bounds = array<i64: 3, 32, 32>}, {pipeline_mode = #tpu.pipeline_mode<synchronous>, transform_indices = @transform_4, window_bounds = array<i64: 3, 1, 32>}, {pipeline_mode = #tpu.pipeline_mode<synchronous>, transform_indices = @transform_5, window_bounds = array<i64: 32, 32>}, {pipeline_mode = #tpu.pipeline_mode<synchronous>, transform_indices = @transform_6, window_bounds = array<i64: 1, 32>}, {transform_indices = @transform_7, window_bounds = array<i64: 8, 32>}]} {
    %c0 = arith.constant 0 : index
    %c0_0 = arith.constant 0 : index
    %0 = vector.load %arg1[%c0, %c0_0] : memref<8x32xf32, #tpu.memory_space<vmem>>, vector<8x32xf32>
    %1 = arith.truncf %0 : vector<8x32xf32> to vector<8x32xbf16>
    %c0_1 = arith.constant 0 : index
    %c0_2 = arith.constant 0 : index
    %2 = vector.load %arg2[%c0_1, %c0_2] : memref<8x32xf32, #tpu.memory_space<vmem>>, vector<8x32xf32>
    %3 = arith.truncf %2 : vector<8x32xf32> to vector<8x32xbf16>
    %c0_3 = arith.constant 0 : index
    %c0_4 = arith.constant 0 : index
    %4 = vector.load %arg3[%c0_3, %c0_4] : memref<8x32xf32, #tpu.memory_space<vmem>>, vector<8x32xf32>
    %5 = arith.truncf %4 : vector<8x32xf32> to vector<8x32xbf16>
    %c0_5 = arith.constant 0 : index
    %c0_6 = arith.constant 0 : index
    %c0_7 = arith.constant 0 : index
    %6 = vector.load %arg4[%c0_5, %c0_6, %c0_7] : memref<3x32x32xbf16, #tpu.memory_space<vmem>>, vector<1x32x32xbf16>
    %7 = vector.shape_cast %6 : vector<1x32x32xbf16> to vector<32x32xbf16>
    %cst = arith.constant dense<0.000000e+00> : vector<8x32xf32>
    %8 = tpu.matmul %1, %7, %cst {dimension_numbers = #tpu.dot_dimension_numbers<[1], [0], [0], [1], [0, 0, 1, 1], [], []>} : vector<8x32xbf16>, vector<32x32xbf16>, vector<8x32xf32> -> vector<8x32xf32>
    %c0_8 = arith.constant 0 : index
    %c0_9 = arith.constant 0 : index
    %c0_10 = arith.constant 0 : index
    %9 = vector.load %arg5[%c0_8, %c0_9, %c0_10] : memref<3x1x32xf32, #tpu.memory_space<vmem>>, vector<1x1x32xf32>
    %10 = vector.shape_cast %9 : vector<1x1x32xf32> to vector<1x32xf32>
    %11 = vector.broadcast %10 : vector<1x32xf32> to vector<8x32xf32>
    %12 = arith.addf %8, %11 : vector<8x32xf32>
    %c1 = arith.constant 1 : index
    %c0_11 = arith.constant 0 : index
    %c0_12 = arith.constant 0 : index
    %13 = vector.load %arg4[%c1, %c0_11, %c0_12] : memref<3x32x32xbf16, #tpu.memory_space<vmem>>, vector<1x32x32xbf16>
    %14 = vector.shape_cast %13 : vector<1x32x32xbf16> to vector<32x32xbf16>
    %cst_13 = arith.constant dense<0.000000e+00> : vector<8x32xf32>
    %15 = tpu.matmul %3, %14, %cst_13 {dimension_numbers = #tpu.dot_dimension_numbers<[1], [0], [0], [1], [0, 0, 1, 1], [], []>} : vector<8x32xbf16>, vector<32x32xbf16>, vector<8x32xf32> -> vector<8x32xf32>
    %c1_14 = arith.constant 1 : index
    %c0_15 = arith.constant 0 : index
    %c0_16 = arith.constant 0 : index
    %16 = vector.load %arg5[%c1_14, %c0_15, %c0_16] : memref<3x1x32xf32, #tpu.memory_space<vmem>>, vector<1x1x32xf32>
    %17 = vector.shape_cast %16 : vector<1x1x32xf32> to vector<1x32xf32>
    %18 = vector.broadcast %17 : vector<1x32xf32> to vector<8x32xf32>
    %19 = arith.addf %15, %18 : vector<8x32xf32>
    %c2 = arith.constant 2 : index
    %c0_17 = arith.constant 0 : index
    %c0_18 = arith.constant 0 : index
    %20 = vector.load %arg4[%c2, %c0_17, %c0_18] : memref<3x32x32xbf16, #tpu.memory_space<vmem>>, vector<1x32x32xbf16>
    %21 = vector.shape_cast %20 : vector<1x32x32xbf16> to vector<32x32xbf16>
    %cst_19 = arith.constant dense<0.000000e+00> : vector<8x32xf32>
    %22 = tpu.matmul %5, %21, %cst_19 {dimension_numbers = #tpu.dot_dimension_numbers<[1], [0], [0], [1], [0, 0, 1, 1], [], []>} : vector<8x32xbf16>, vector<32x32xbf16>, vector<8x32xf32> -> vector<8x32xf32>
    %c2_20 = arith.constant 2 : index
    %c0_21 = arith.constant 0 : index
    %c0_22 = arith.constant 0 : index
    %23 = vector.load %arg5[%c2_20, %c0_21, %c0_22] : memref<3x1x32xf32, #tpu.memory_space<vmem>>, vector<1x1x32xf32>
    %24 = vector.shape_cast %23 : vector<1x1x32xf32> to vector<1x32xf32>
    %25 = vector.broadcast %24 : vector<1x32xf32> to vector<8x32xf32>
    %26 = arith.addf %22, %25 : vector<8x32xf32>
    %27 = vector.shape_cast %12 : vector<8x32xf32> to vector<1x8x32xf32>
    %28 = vector.shape_cast %19 : vector<8x32xf32> to vector<1x8x32xf32>
    %29 = vector.shape_cast %26 : vector<8x32xf32> to vector<1x8x32xf32>
    %30 = vector.extract_strided_slice %27 {offsets = [0, 0, 0], sizes = [1, 8, 8], strides = [1, 1, 1]} : vector<1x8x32xf32> to vector<1x8x8xf32>
    %31 = arith.truncf %30 : vector<1x8x8xf32> to vector<1x8x8xbf16>
    %32 = vector.extract_strided_slice %28 {offsets = [0, 0, 0], sizes = [1, 8, 8], strides = [1, 1, 1]} : vector<1x8x32xf32> to vector<1x8x8xf32>
    %33 = arith.truncf %32 : vector<1x8x8xf32> to vector<1x8x8xbf16>
    %34 = vector.extract_strided_slice %29 {offsets = [0, 0, 0], sizes = [1, 8, 8], strides = [1, 1, 1]} : vector<1x8x32xf32> to vector<1x8x8xf32>
    %35 = arith.truncf %34 : vector<1x8x8xf32> to vector<1x8x8xbf16>
    %cst_23 = arith.constant dense<0.000000e+00> : vector<1x8x8xf32>
    %36 = tpu.matmul %31, %33, %cst_23 {dimension_numbers = #tpu.dot_dimension_numbers<[2], [2], [1], [1], [0, 0, 0, 1, 1, 1], [0], [0]>} : vector<1x8x8xbf16>, vector<1x8x8xbf16>, vector<1x8x8xf32> -> vector<1x8x8xf32>
    %cst_24 = arith.constant dense<0xFF800000> : vector<1x8xf32>
    %37 = vector.multi_reduction <maximumf>, %36, %cst_24 [2] : vector<1x8x8xf32> to vector<1x8xf32>
    %38 = vector.shape_cast %37 : vector<1x8xf32> to vector<1x8x1xf32>
    %39 = vector.broadcast %38 : vector<1x8x1xf32> to vector<1x8x8xf32>
    %40 = arith.subf %36, %39 : vector<1x8x8xf32>
    %41 = math.exp %40 : vector<1x8x8xf32>
    %cst_25 = arith.constant dense<0.000000e+00> : vector<1x8xf32>
    %42 = vector.multi_reduction <add>, %41, %cst_25 [2] : vector<1x8x8xf32> to vector<1x8xf32>
    %43 = vector.shape_cast %42 : vector<1x8xf32> to vector<1x8x1xf32>
    %44 = tpu.reciprocal %43 : vector<1x8x1xf32> -> vector<1x8x1xf32>
    %45 = vector.broadcast %44 : vector<1x8x1xf32> to vector<1x8x8xf32>
    %46 = arith.mulf %41, %45 : vector<1x8x8xf32>
    %47 = arith.truncf %46 : vector<1x8x8xf32> to vector<1x8x8xbf16>
    %cst_26 = arith.constant dense<0.000000e+00> : vector<1x8x8xf32>
    %48 = tpu.matmul %47, %35, %cst_26 {dimension_numbers = #tpu.dot_dimension_numbers<[2], [1], [1], [2], [0, 0, 0, 1, 1, 2], [0], [0]>} : vector<1x8x8xbf16>, vector<1x8x8xbf16>, vector<1x8x8xf32> -> vector<1x8x8xf32>
    %49 = vector.shape_cast %48 : vector<1x8x8xf32> to vector<8x8xf32>
    %50 = arith.truncf %49 : vector<8x8xf32> to vector<8x8xbf16>
    %c0_27 = arith.constant 0 : index
    %c0_28 = arith.constant 0 : index
    %51 = vector.load %arg9[%c0_27, %c0_28] : memref<8x32xbf16, #tpu.memory_space<vmem>>, vector<8x8xbf16>
    tpu.vector_store %arg9[%c0_27, %c0_28], %50 {strides = array<i32>} : memref<8x32xbf16, #tpu.memory_space<vmem>>, vector<8x8xbf16>,
    %52 = vector.extract_strided_slice %27 {offsets = [0, 0, 8], sizes = [1, 8, 8], strides = [1, 1, 1]} : vector<1x8x32xf32> to vector<1x8x8xf32>
    %53 = arith.truncf %52 : vector<1x8x8xf32> to vector<1x8x8xbf16>
    %54 = vector.extract_strided_slice %28 {offsets = [0, 0, 8], sizes = [1, 8, 8], strides = [1, 1, 1]} : vector<1x8x32xf32> to vector<1x8x8xf32>
    %55 = arith.truncf %54 : vector<1x8x8xf32> to vector<1x8x8xbf16>
    %56 = vector.extract_strided_slice %29 {offsets = [0, 0, 8], sizes = [1, 8, 8], strides = [1, 1, 1]} : vector<1x8x32xf32> to vector<1x8x8xf32>
    %57 = arith.truncf %56 : vector<1x8x8xf32> to vector<1x8x8xbf16>
    %cst_29 = arith.constant dense<0.000000e+00> : vector<1x8x8xf32>
    %58 = tpu.matmul %53, %55, %cst_29 {dimension_numbers = #tpu.dot_dimension_numbers<[2], [2], [1], [1], [0, 0, 0, 1, 1, 1], [0], [0]>} : vector<1x8x8xbf16>, vector<1x8x8xbf16>, vector<1x8x8xf32> -> vector<1x8x8xf32>
    %cst_30 = arith.constant dense<0xFF800000> : vector<1x8xf32>
    %59 = vector.multi_reduction <maximumf>, %58, %cst_30 [2] : vector<1x8x8xf32> to vector<1x8xf32>
    %60 = vector.shape_cast %59 : vector<1x8xf32> to vector<1x8x1xf32>
    %61 = vector.broadcast %60 : vector<1x8x1xf32> to vector<1x8x8xf32>
    %62 = arith.subf %58, %61 : vector<1x8x8xf32>
    %63 = math.exp %62 : vector<1x8x8xf32>
    %cst_31 = arith.constant dense<0.000000e+00> : vector<1x8xf32>
    %64 = vector.multi_reduction <add>, %63, %cst_31 [2] : vector<1x8x8xf32> to vector<1x8xf32>
    %65 = vector.shape_cast %64 : vector<1x8xf32> to vector<1x8x1xf32>
    %66 = tpu.reciprocal %65 : vector<1x8x1xf32> -> vector<1x8x1xf32>
    %67 = vector.broadcast %66 : vector<1x8x1xf32> to vector<1x8x8xf32>
    %68 = arith.mulf %63, %67 : vector<1x8x8xf32>
    %69 = arith.truncf %68 : vector<1x8x8xf32> to vector<1x8x8xbf16>
    %cst_32 = arith.constant dense<0.000000e+00> : vector<1x8x8xf32>
    %70 = tpu.matmul %69, %57, %cst_32 {dimension_numbers = #tpu.dot_dimension_numbers<[2], [1], [1], [2], [0, 0, 0, 1, 1, 2], [0], [0]>} : vector<1x8x8xbf16>, vector<1x8x8xbf16>, vector<1x8x8xf32> -> vector<1x8x8xf32>
    %71 = vector.shape_cast %70 : vector<1x8x8xf32> to vector<8x8xf32>
    %72 = arith.truncf %71 : vector<8x8xf32> to vector<8x8xbf16>
    %c0_33 = arith.constant 0 : index
    %c8 = arith.constant 8 : index
    %73 = vector.load %arg9[%c0_33, %c8] : memref<8x32xbf16, #tpu.memory_space<vmem>>, vector<8x8xbf16>
    tpu.vector_store %arg9[%c0_33, %c8], %72 {strides = array<i32>} : memref<8x32xbf16, #tpu.memory_space<vmem>>, vector<8x8xbf16>,
    %74 = vector.extract_strided_slice %27 {offsets = [0, 0, 16], sizes = [1, 8, 8], strides = [1, 1, 1]} : vector<1x8x32xf32> to vector<1x8x8xf32>
    %75 = arith.truncf %74 : vector<1x8x8xf32> to vector<1x8x8xbf16>
    %76 = vector.extract_strided_slice %28 {offsets = [0, 0, 16], sizes = [1, 8, 8], strides = [1, 1, 1]} : vector<1x8x32xf32> to vector<1x8x8xf32>
    %77 = arith.truncf %76 : vector<1x8x8xf32> to vector<1x8x8xbf16>
    %78 = vector.extract_strided_slice %29 {offsets = [0, 0, 16], sizes = [1, 8, 8], strides = [1, 1, 1]} : vector<1x8x32xf32> to vector<1x8x8xf32>
    %79 = arith.truncf %78 : vector<1x8x8xf32> to vector<1x8x8xbf16>
    %cst_34 = arith.constant dense<0.000000e+00> : vector<1x8x8xf32>
    %80 = tpu.matmul %75, %77, %cst_34 {dimension_numbers = #tpu.dot_dimension_numbers<[2], [2], [1], [1], [0, 0, 0, 1, 1, 1], [0], [0]>} : vector<1x8x8xbf16>, vector<1x8x8xbf16>, vector<1x8x8xf32> -> vector<1x8x8xf32>
    %cst_35 = arith.constant dense<0xFF800000> : vector<1x8xf32>
    %81 = vector.multi_reduction <maximumf>, %80, %cst_35 [2] : vector<1x8x8xf32> to vector<1x8xf32>
    %82 = vector.shape_cast %81 : vector<1x8xf32> to vector<1x8x1xf32>
    %83 = vector.broadcast %82 : vector<1x8x1xf32> to vector<1x8x8xf32>
    %84 = arith.subf %80, %83 : vector<1x8x8xf32>
    %85 = math.exp %84 : vector<1x8x8xf32>
    %cst_36 = arith.constant dense<0.000000e+00> : vector<1x8xf32>
    %86 = vector.multi_reduction <add>, %85, %cst_36 [2] : vector<1x8x8xf32> to vector<1x8xf32>
    %87 = vector.shape_cast %86 : vector<1x8xf32> to vector<1x8x1xf32>
    %88 = tpu.reciprocal %87 : vector<1x8x1xf32> -> vector<1x8x1xf32>
    %89 = vector.broadcast %88 : vector<1x8x1xf32> to vector<1x8x8xf32>
    %90 = arith.mulf %85, %89 : vector<1x8x8xf32>
    %91 = arith.truncf %90 : vector<1x8x8xf32> to vector<1x8x8xbf16>
    %cst_37 = arith.constant dense<0.000000e+00> : vector<1x8x8xf32>
    %92 = tpu.matmul %91, %79, %cst_37 {dimension_numbers = #tpu.dot_dimension_numbers<[2], [1], [1], [2], [0, 0, 0, 1, 1, 2], [0], [0]>} : vector<1x8x8xbf16>, vector<1x8x8xbf16>, vector<1x8x8xf32> -> vector<1x8x8xf32>
    %93 = vector.shape_cast %92 : vector<1x8x8xf32> to vector<8x8xf32>
    %94 = arith.truncf %93 : vector<8x8xf32> to vector<8x8xbf16>
    %c0_38 = arith.constant 0 : index
    %c16 = arith.constant 16 : index
    %95 = vector.load %arg9[%c0_38, %c16] : memref<8x32xbf16, #tpu.memory_space<vmem>>, vector<8x8xbf16>
    tpu.vector_store %arg9[%c0_38, %c16], %94 {strides = array<i32>} : memref<8x32xbf16, #tpu.memory_space<vmem>>, vector<8x8xbf16>,
    %96 = vector.extract_strided_slice %27 {offsets = [0, 0, 24], sizes = [1, 8, 8], strides = [1, 1, 1]} : vector<1x8x32xf32> to vector<1x8x8xf32>
    %97 = arith.truncf %96 : vector<1x8x8xf32> to vector<1x8x8xbf16>
    %98 = vector.extract_strided_slice %28 {offsets = [0, 0, 24], sizes = [1, 8, 8], strides = [1, 1, 1]} : vector<1x8x32xf32> to vector<1x8x8xf32>
    %99 = arith.truncf %98 : vector<1x8x8xf32> to vector<1x8x8xbf16>
    %100 = vector.extract_strided_slice %29 {offsets = [0, 0, 24], sizes = [1, 8, 8], strides = [1, 1, 1]} : vector<1x8x32xf32> to vector<1x8x8xf32>
    %101 = arith.truncf %100 : vector<1x8x8xf32> to vector<1x8x8xbf16>
    %cst_39 = arith.constant dense<0.000000e+00> : vector<1x8x8xf32>
    %102 = tpu.matmul %97, %99, %cst_39 {dimension_numbers = #tpu.dot_dimension_numbers<[2], [2], [1], [1], [0, 0, 0, 1, 1, 1], [0], [0]>} : vector<1x8x8xbf16>, vector<1x8x8xbf16>, vector<1x8x8xf32> -> vector<1x8x8xf32>
    %cst_40 = arith.constant dense<0xFF800000> : vector<1x8xf32>
    %103 = vector.multi_reduction <maximumf>, %102, %cst_40 [2] : vector<1x8x8xf32> to vector<1x8xf32>
    %104 = vector.shape_cast %103 : vector<1x8xf32> to vector<1x8x1xf32>
    %105 = vector.broadcast %104 : vector<1x8x1xf32> to vector<1x8x8xf32>
    %106 = arith.subf %102, %105 : vector<1x8x8xf32>
    %107 = math.exp %106 : vector<1x8x8xf32>
    %cst_41 = arith.constant dense<0.000000e+00> : vector<1x8xf32>
    %108 = vector.multi_reduction <add>, %107, %cst_41 [2] : vector<1x8x8xf32> to vector<1x8xf32>
    %109 = vector.shape_cast %108 : vector<1x8xf32> to vector<1x8x1xf32>
    %110 = tpu.reciprocal %109 : vector<1x8x1xf32> -> vector<1x8x1xf32>
    %111 = vector.broadcast %110 : vector<1x8x1xf32> to vector<1x8x8xf32>
    %112 = arith.mulf %107, %111 : vector<1x8x8xf32>
    %113 = arith.truncf %112 : vector<1x8x8xf32> to vector<1x8x8xbf16>
    %cst_42 = arith.constant dense<0.000000e+00> : vector<1x8x8xf32>
    %114 = tpu.matmul %113, %101, %cst_42 {dimension_numbers = #tpu.dot_dimension_numbers<[2], [1], [1], [2], [0, 0, 0, 1, 1, 2], [0], [0]>} : vector<1x8x8xbf16>, vector<1x8x8xbf16>, vector<1x8x8xf32> -> vector<1x8x8xf32>
    %115 = vector.shape_cast %114 : vector<1x8x8xf32> to vector<8x8xf32>
    %116 = arith.truncf %115 : vector<8x8xf32> to vector<8x8xbf16>
    %c0_43 = arith.constant 0 : index
    %c24 = arith.constant 24 : index
    %117 = vector.load %arg9[%c0_43, %c24] : memref<8x32xbf16, #tpu.memory_space<vmem>>, vector<8x8xbf16>
    tpu.vector_store %arg9[%c0_43, %c24], %116 {strides = array<i32>} : memref<8x32xbf16, #tpu.memory_space<vmem>>, vector<8x8xbf16>,
    %c0_44 = arith.constant 0 : index
    %c0_45 = arith.constant 0 : index
    %118 = vector.load %arg9[%c0_44, %c0_45] : memref<8x32xbf16, #tpu.memory_space<vmem>>, vector<8x32xbf16>
    %c0_46 = arith.constant 0 : index
    %c0_47 = arith.constant 0 : index
    %119 = vector.load %arg6[%c0_46, %c0_47] : memref<32x32xbf16, #tpu.memory_space<vmem>>, vector<32x32xbf16>
    %cst_48 = arith.constant dense<0.000000e+00> : vector<8x32xf32>
    %120 = tpu.matmul %118, %119, %cst_48 {dimension_numbers = #tpu.dot_dimension_numbers<[1], [0], [0], [1], [0, 0, 1, 1], [], []>} : vector<8x32xbf16>, vector<32x32xbf16>, vector<8x32xf32> -> vector<8x32xf32>
    %c0_49 = arith.constant 0 : index
    %c0_50 = arith.constant 0 : index
    %121 = vector.load %arg7[%c0_49, %c0_50] : memref<1x32xf32, #tpu.memory_space<vmem>>, vector<1x32xf32>
    %122 = vector.broadcast %121 : vector<1x32xf32> to vector<8x32xf32>
    %123 = arith.addf %120, %122 : vector<8x32xf32>
    %c0_51 = arith.constant 0 : index
    %c0_52 = arith.constant 0 : index
    %124 = vector.load %arg8[%c0_51, %c0_52] : memref<8x32xf32, #tpu.memory_space<vmem>>, vector<8x32xf32>
    tpu.vector_store %arg8[%c0_51, %c0_52], %123 {strides = array<i32>} : memref<8x32xf32, #tpu.memory_space<vmem>>, vector<8x32xf32>,
    return
  }
  func.func @transform_0(%arg0: i32) -> (i32, i32) {
    %c0_i32 = arith.constant 0 : i32
    %c0_i32_0 = arith.constant 0 : i32
    return %arg0, %c0_i32 : i32, i32
  }
  func.func @transform_1(%arg0: i32) -> (i32, i32) {
    %c0_i32 = arith.constant 0 : i32
    %c0_i32_0 = arith.constant 0 : i32
    return %arg0, %c0_i32 : i32, i32
  }
  func.func @transform_2(%arg0: i32) -> (i32, i32) {
    %c0_i32 = arith.constant 0 : i32
    %c0_i32_0 = arith.constant 0 : i32
    return %arg0, %c0_i32 : i32, i32
  }
  func.func @transform_3(%arg0: i32) -> (i32, i32, i32) {
    %c0_i32 = arith.constant 0 : i32
    %c0_i32_0 = arith.constant 0 : i32
    %c0_i32_1 = arith.constant 0 : i32
    %c0_i32_2 = arith.constant 0 : i32
    return %c0_i32, %c0_i32_0, %c0_i32_1 : i32, i32, i32
  }
  func.func @transform_4(%arg0: i32) -> (i32, i32, i32) {
    %c0_i32 = arith.constant 0 : i32
    %c0_i32_0 = arith.constant 0 : i32
    %c0_i32_1 = arith.constant 0 : i32
    %c0_i32_2 = arith.constant 0 : i32
    return %c0_i32, %c0_i32_0, %c0_i32_1 : i32, i32, i32
  }
  func.func @transform_5(%arg0: i32) -> (i32, i32) {
    %c0_i32 = arith.constant 0 : i32
    %c0_i32_0 = arith.constant 0 : i32
    %c0_i32_1 = arith.constant 0 : i32
    return %c0_i32, %c0_i32_0 : i32, i32
  }
  func.func @transform_6(%arg0: i32) -> (i32, i32) {
    %c0_i32 = arith.constant 0 : i32
    %c0_i32_0 = arith.constant 0 : i32
    %c0_i32_1 = arith.constant 0 : i32
    return %c0_i32, %c0_i32_0 : i32, i32
  }
  func.func @transform_7(%arg0: i32) -> (i32, i32) {
    %c0_i32 = arith.constant 0 : i32
    %c0_i32_0 = arith.constant 0 : i32
    return %arg0, %c0_i32 : i32, i32
  }
}

</mosaic_0001>

<bundles_post_ra>
// kernel: tpu_custom_call.1
= control target key start
LH: loop header
LB: loop body
LE: loop exit
PB: predicated region body
PF: predicated region fallthrough
CT: control target
= control target key end

     0   :  { %s2230_s0 = inlined_call_operand.hbm [shape: f32[16,32], index: 0, kind: input, shape index: {}]   ;;  %s2231_s1 = inlined_call_operand.hbm [shape: f32[16,32], index: 1, kind: input, shape index: {}]   ;;  %s2232_s2 = inlined_call_operand.hbm [shape: f32[16,32], index: 2, kind: input, shape index: {}]   ;;  %s2233_s3 = inlined_call_operand.hbm [shape: bf16[3,32,32], index: 3, kind: input, shape index: {}]   ;;  %s2234_s4 = inlined_call_operand.hbm [shape: f32[3,1,32], index: 4, kind: input, shape index: {}]   ;;  %s2235_s5 = inlined_call_operand.vmem [shape: bf16[32,32], index: 5, kind: input, shape index: {}]   ;;  %s2236_s6 = inlined_call_operand.vmem [shape: f32[1,32], index: 6, kind: input, shape index: {}]   ;;  %s2237_s7 = inlined_call_operand.hbm [shape: f32[16,32], index: 7, kind: output, shape index: {}]  }
   0x1   :  { %2255 = sst [smem:[#allocation22_spill]] %s2231_s1 }
   0x2   :  { %2256 = sst [smem:[#allocation23_spill]] %s2233_s3 }
   0x3   :  { %12 = vsyncpa [#allocation4], 0 }
   0x4   :  { %14 = vsyncpa [#allocation4 + $0x1], 0 }
   0x5   :  { %15 = vsyncpa [#allocation7], 0 }
   0x6   :  { %17 = vsyncpa [#allocation7 + $0x1], 0 }
   0x7   :  { %18 = vsyncpa [#allocation10], 0 }
   0x8   :  { %19 = vsyncpa [#allocation5], 0 }
   0x9   :  { %21 = vsyncpa [#allocation5 + $0x1], 0  ;;  %s1843_s24 = smov 0   ;;  %s1845_s25 = smov 0  }
   0xa   :  { %s1847_s26 = smov 0   ;;  %s1849_s27 = smov 0  }
   0xb LB: > { %2257 = sst [smem:[#allocation17_spill]] %s1771_s24  ;;  %s1864_s28 = sadd.s32 4294967295, %s1783_s27   ;;  %s1783_s27 = sphi %s1849_s27, %s2289_s27   ;;  %s1779_s26 = sphi %s1847_s26, %s2293_s26   ;;  %s1775_s25 = sphi %s1845_s25, %s2292_s25   ;;  %s1771_s24 = sphi %s1843_s24, %s2291_s24  }
   0xc   : > { %2258 = sst [smem:[#allocation18_spill]] %s1783_s27  ;;  %s1290_s29 = sadd.s32 4294967294, %s1783_s27  }
   0xd   : > { %p47_p0 = scmp.ne.s32.totalorder %s1775_s25, %s1771_s24  ;;  %p2238_p1 = scmp.eq.s32.totalorder %s1864_s28, 0 }
   0xe   : > { %p213_p3 = scmp.eq.s32.totalorder %s1290_s29, 1  ;;  %p1291_p5 = scmp.ge.s32.totalorder %s1783_s27, 1 }
   0xf   : > { %p1873_p4 = por %p2238_p1, %p47_p0  ;;  %p220_p7 = scmp.lt.s32.totalorder %s1783_s27, 3 }
  0x10   : > { %p1878_p6 = por %p213_p3, %p47_p0  ;;  %s1785_s10 = smov [#allocation9]  }
  0x11   : > { %s2259_s30 = scalar_select %p1873_p4, 1, 0 }
  0x12   : > { %s2260_s8 = scalar_select %p1878_p6, 1, 0 }
  0x13   : > { %p1883_p8 = pnand %p1291_p5, %p220_p7  ;;  %s232_s11 = sshll.u32 %s1785_s10, 4  ;;  %s1887_s11 = int_to_ptr.vmem [resolvable:$true] %s232_s11 }
  0x14   : > { %2261 = sst [smem:[#allocation19_spill]] %s2260_s8  ;;  %s1899_s13 = sadd.s32 1, %s1783_s27  }
  0x15   : > { %s2262_s9 = scalar_select %p1883_p8, 1, 0 }
  0x16   : > { %p1466_p9 = pneg %p1883_p8  ;;  %2264 = sst [smem:[#allocation20_spill]] %s1899_s13 }
  0x17   : > { %s34_s14 = sadd.s32 1, %s1779_s26  ;;  %s31_s15 = ssub.s32 %s1783_s27, %s1899_s13 }
  0x18   : > { %p1894_p11 = pnand %p1466_p9, %p2238_p1  ;;  %s2265_s3 = sld [smem:[#allocation23_spill]] }
  0x1a   : > { %s2263_s12 = scalar_select %p1894_p11, 1, 0 }
  0x1b   : > { %p2242_p13 = pneg %p1894_p11 }
  0x1e   : > { %s1563_s18 = scalar_lea.hbm %s2265_s3, 768 }
  0x1f   : > { %p1564_p12 = scmp.ne.s32.totalorder %s2265_s3, %s1563_s18  ;;  %p1570_p5 = scmp.lt.u32.totalorder %s1563_s18, %s2265_s3 }
  0x21   : > { %p1566_p0 = pnand %p2242_p13, %p1564_p12 }
  0x23   : > { %p1567_p3 = pneg %p1566_p0 }
  0x25   : > { %p1572_p7 = pnand %p1570_p5, %p1567_p3 }
  0x27   : > { %1575 = shalt.err (!%p1572_p7)
}
  0x28   : > { %s1576_s23 = scalar_lea.vmem %s1887_s11, 768  ;;  %p1584_p2 = scmp.lt.s32.totalorder %s1887_s11, %s1887_s11 }
  0x29   : > { %p1577_p9 = scmp.ne.s32.totalorder %s1887_s11, %s1576_s23  ;;  %p1585_p12 = scmp.lt.s32.totalorder %s1576_s23, %s1576_s23 }
  0x2b   : > { %p1579_p10 = pnand %p1577_p9, %p2242_p13  ;;  %p1586_p0 = por %p1585_p12, %p1584_p2 }
  0x2d   : > { %p1580_p1 = pneg %p1579_p10 }
  0x2f   : > { %p1587_p6 = pnand %p1586_p0, %p1580_p1 }
  0x31   : > { %1590 = shalt.err (!%p1587_p6)
}
  0x32   : > { %s1786_s29 = smov 64   ;;  %s1787_s10 = smov 4  }
  0x33   : > { %1469 = dma.hbm_to_vmem [thread:$0]  (!%p1894_p11), %s2265_s3, 768, %s1887_s11, [#allocation10], %s1786_s29, %s1786_s29, %s1787_s10  }
  0x34   : > { %p32_p1 = scmp.eq.s32.totalorder %s31_s15, 0  ;;  %p41_p2 = scmp.ne.s32.totalorder %s1779_s26, %s1775_s25 }
  0x35   : > { %p42_p6 = scmp.eq.s32.totalorder %s1783_s27, 0  ;;  %p1489_p10 = scmp.lt.s32.totalorder %s1783_s27, 2 }
  0x36   : > { %s1936_s18 = scalar_select %p32_p1, %s1779_s26, %s34_s14  }
  0x37   : > { %p43_p3 = por %p42_p6, %p41_p2  ;;  %p2267_p5 = scmp.eq.s32.totalorder %s1864_s28, 1 }
  0x38   : > { %2266 = sst [smem:[#allocation21_spill]] %s1936_s18  ;;  %s2239_s20 = sand.u32 1, %s1779_s26  }
  0x39   : > { %p1940_p7 = por %p2267_p5, %p41_p2  ;;  %s1946_s21 = sshll.u32 %s1783_s27, 7 }
  0x3a   : > { %s1950_s22 = sshll.u32 %s2239_s20, 3  ;;  %p1952_p9 = pnand %p1489_p10, %p43_p3 }
  0x3b   : > { %s2268_s19 = scalar_select %p1940_p7, 1, 0 }
  0x3c   : > { %s2269_s11 = scalar_select %p1952_p9, 1, 0 }
  0x3d   : > { %s283_s14 = sand.u32 1, %s1783_s27   ;;  %s2270_s1 = sld [smem:[#allocation22_spill]] }
  0x3e   : > { %s287_s10 = scalar_lea.vmem [#allocation6], %s1950_s22  ;;  %s1966_s17 = scalar_lea.sflag [#allocation7], %s283_s14 }
  0x3f   : > { %s294_s16 = sshll.u32 %s287_s10, 4  ;;  %p1972_p0 = pneg %p1952_p9  ;;  %s1964_s16 = int_to_ptr.vmem [resolvable:$true] %s294_s16 }
  0x41   : > { %s2271_s3 = scalar_select %p1972_p0, 1, 0 }
  0x43   : > { %s1961_s29 = scalar_lea.hbm %s2270_s1, %s1946_s21  ;;  %s1596_s18 = scalar_lea.hbm %s2270_s1, 256 }
  0x44   : > { %s1591_s20 = scalar_lea.hbm %s1961_s29, 128  ;;  %p1597_p6 = scmp.lt.u32.totalorder %s1961_s29, %s2270_s1 }
  0x45   : > { %p1592_p12 = scmp.ne.s32.totalorder %s1961_s29, %s1591_s20  ;;  %p1598_p10 = scmp.lt.u32.totalorder %s1596_s18, %s1591_s20 }
  0x46   : > { %p1600_p5 = scmp.lt.u32.totalorder %s1591_s20, %s1961_s29 }
  0x47   : > { %p1594_p1 = pnand %p1972_p0, %p1592_p12  ;;  %p1599_p3 = por %p1598_p10, %p1597_p6 }
  0x49   : > { %p1595_p2 = pneg %p1594_p1  ;;  %p1601_p13 = por %p1600_p5, %p1599_p3 }
  0x4b   : > { %p1602_p7 = pnand %p1601_p13, %p1595_p2 }
  0x4d   : > { %1605 = shalt.err (!%p1602_p7)
}
  0x4e   : > { %s1606_s14 = scalar_lea.vmem %s1964_s16, 128  ;;  %s1788_s15 = smov [#allocation6]  }
  0x4f   : > { %p1607_p12 = scmp.ne.s32.totalorder %s1964_s16, %s1606_s14  ;;  %s1611_s23 = sshll.u32 %s1788_s15, 4  ;;  %s1612_s23 = int_to_ptr.vmem [resolvable:$false] %s1611_s23 }
  0x50   : > { %s1613_s13 = scalar_lea.vmem %s1612_s23, 256  ;;  %p1614_p8 = scmp.lt.s32.totalorder %s1964_s16, %s1612_s23 }
  0x51   : > { %p1609_p1 = pnand %p1607_p12, %p1972_p0  ;;  %p1615_p11 = scmp.lt.s32.totalorder %s1613_s13, %s1606_s14 }
  0x53   : > { %p1610_p4 = pneg %p1609_p1  ;;  %p1616_p6 = por %p1615_p11, %p1614_p8 }
  0x55   : > { %p1617_p10 = pnand %p1616_p6, %p1610_p4 }
  0x57   : > { %1620 = shalt.err (!%p1617_p10)
}
  0x58   : > { %1479 = dma.hbm_to_vmem [thread:$0]  (!%p1952_p9), %s1961_s29, 128, %s1964_s16, %s1966_s17  }
  0x59   : > { %s1789_s18 = smov [#allocation11]   ;;  %s1621_s15 = scalar_lea.hbm %s2234_s4, 48 }
  0x5a   : > { %s245_s20 = sshll.u32 %s1789_s18, 4  ;;  %p1622_p8 = scmp.ne.s32.totalorder %s2234_s4, %s1621_s15  ;;  %s246_s20 = int_to_ptr.vmem [resolvable:$true] %s245_s20 }
  0x5b   : > { %p2272_p4 = scmp.ne.s32.totalorder %s2263_s12, 0  ;;  %p1628_p2 = scmp.lt.u32.totalorder %s1621_s15, %s2234_s4 }
  0x5d   : > { %p2273_p11 = pneg %p2272_p4 }
  0x5f   : > { %p1624_p13 = pnand %p1622_p8, %p2273_p11 }
  0x61   : > { %p1625_p7 = pneg %p1624_p13 }
  0x63   : > { %p1630_p3 = pnand %p1628_p2, %p1625_p7 }
  0x65   : > { %1633 = shalt.err (!%p1630_p3)
}
  0x66   : > { %s1634_s29 = scalar_lea.vmem %s246_s20, 48  ;;  %p2274_p12 = pmov %p2273_p11 }
  0x67   : > { %p1635_p5 = scmp.ne.s32.totalorder %s246_s20, %s1634_s29  ;;  %s1641_s1 = scalar_lea.vmem %s246_s20, 64 }
  0x68   : > { %p1642_p10 = scmp.lt.s32.totalorder %s246_s20, %s246_s20  ;;  %p1643_p9 = scmp.lt.s32.totalorder %s1641_s1, %s1634_s29 }
  0x69   : > { %p1637_p1 = pnand %p1635_p5, %p2274_p12 }
  0x6a   : > { %p1644_p0 = por %p1643_p9, %p1642_p10 }
  0x6b   : > { %p1638_p6 = pneg %p1637_p1 }
  0x6d   : > { %p1645_p8 = pnand %p1644_p0, %p1638_p6 }
  0x6f   : > { %1648 = shalt.err (!%p1645_p8)
}
  0x70   : > { %s1790_s27 = smov 16   ;;  %s1791_s16 = smov 1  }
  0x71   : > { %1472 = dma.hbm_to_vmem [thread:$0]  (!%p2272_p4), %s2234_s4, 48, %s246_s20, [#allocation10], %s1790_s27, %s1790_s27, %s1791_s16  }
  0x72   : > { %s2020_s14 = scalar_lea.hbm %s2230_s0, %s1946_s21  ;;  %s269_s13 = scalar_lea.vmem [#allocation3], %s1950_s22 }
  0x73   : > { %s276_s29 = sshll.u32 %s269_s13, 4  ;;  %s2275_s1 = sand.u32 1, %s1779_s26   ;;  %s277_s29 = int_to_ptr.vmem [resolvable:$true] %s276_s29 }
  0x74   : > { %s266_s8 = scalar_lea.sflag [#allocation4], %s2275_s1  ;;  %s1649_s24 = scalar_lea.hbm %s2020_s14, 128 }
  0x75   : > { %p1650_p9 = scmp.ne.s32.totalorder %s2020_s14, %s1649_s24  ;;  %p2276_p0 = scmp.ne.s32.totalorder %s2271_s3, 0 }
  0x76   : > { %s1654_s27 = scalar_lea.hbm %s2230_s0, 256  ;;  %p1655_p4 = scmp.lt.u32.totalorder %s2020_s14, %s2230_s0 }
  0x77   : > { %p1652_p11 = pnand %p1650_p9, %p2276_p0  ;;  %p1656_p7 = scmp.lt.u32.totalorder %s1654_s27, %s1649_s24 }
  0x78   : > { %p1658_p3 = scmp.lt.u32.totalorder %s1649_s24, %s2020_s14 }
  0x79   : > { %p1653_p13 = pneg %p1652_p11  ;;  %p1657_p2 = por %p1656_p7, %p1655_p4 }
  0x7b   : > { %p1659_p5 = por %p1658_p3, %p1657_p2 }
  0x7d   : > { %p1660_p12 = pnand %p1659_p5, %p1653_p13 }
  0x7f   : > { %1663 = shalt.err (!%p1660_p12)
}
  0x80   : > { %s1664_s10 = scalar_lea.vmem %s277_s29, 128  ;;  %s1792_s15 = smov [#allocation3]  }
  0x81   : > { %p1665_p1 = scmp.ne.s32.totalorder %s277_s29, %s1664_s10  ;;  %s1669_s23 = sshll.u32 %s1792_s15, 4  ;;  %s1670_s23 = int_to_ptr.vmem [resolvable:$false] %s1669_s23 }
  0x82   : > { %s1671_s13 = scalar_lea.vmem %s1670_s23, 256  ;;  %p1672_p8 = scmp.lt.s32.totalorder %s277_s29, %s1670_s23 }
  0x83   : > { %p1667_p6 = pnand %p1665_p1, %p2276_p0  ;;  %p1673_p9 = scmp.lt.s32.totalorder %s1671_s13, %s1664_s10 }
  0x85   : > { %p1668_p10 = pneg %p1667_p6  ;;  %p1674_p11 = por %p1673_p9, %p1672_p8 }
  0x87   : > { %p1675_p4 = pnand %p1674_p11, %p1668_p10 }
  0x89   : > { %1678 = shalt.err (!%p1675_p4)
}
  0x8a   : > { %p2277_p7 = scmp.ne.s32.totalorder %s2269_s11, 0  ;;  %s2046_s12 = scalar_lea.hbm %s2232_s2, %s1946_s21 }
  0x8b   : > { %s305_s20 = scalar_lea.vmem [#allocation8], %s1950_s22  ;;  %s1679_s16 = scalar_lea.hbm %s2046_s12, 128 }
  0x8c   : > { %1476 = dma.hbm_to_vmem [thread:$0]  (!%p2277_p7), %s2020_s14, 128, %s277_s29, %s266_s8  }
  0x8d   : > { %s312_s27 = sshll.u32 %s305_s20, 4  ;;  %p1680_p13 = scmp.ne.s32.totalorder %s2046_s12, %s1679_s16  ;;  %s313_s27 = int_to_ptr.vmem [resolvable:$true] %s312_s27 }
  0x8e   : > { %s1684_s8 = scalar_lea.hbm %s2232_s2, 256  ;;  %p1685_p5 = scmp.lt.u32.totalorder %s2046_s12, %s2232_s2 }
  0x8f   : > { %p1682_p2 = pnand %p1680_p13, %p2276_p0  ;;  %p1686_p12 = scmp.lt.u32.totalorder %s1684_s8, %s1679_s16 }
  0x90   : > { %p1688_p6 = scmp.lt.u32.totalorder %s1679_s16, %s2046_s12 }
  0x91   : > { %p1683_p3 = pneg %p1682_p2  ;;  %p1687_p1 = por %p1686_p12, %p1685_p5 }
  0x93   : > { %p1689_p10 = por %p1688_p6, %p1687_p1 }
  0x95   : > { %p1690_p8 = pnand %p1689_p10, %p1683_p3 }
  0x97   : > { %1693 = shalt.err (!%p1690_p8)
}
  0x98   : > { %s1694_s21 = scalar_lea.vmem %s313_s27, 128  ;;  %s1793_s22 = smov [#allocation8]  }
  0x99   : > { %p1695_p9 = scmp.ne.s32.totalorder %s313_s27, %s1694_s21  ;;  %s1699_s15 = sshll.u32 %s1793_s22, 4  ;;  %s1700_s15 = int_to_ptr.vmem [resolvable:$false] %s1699_s15 }
  0x9a   : > { %s1701_s23 = scalar_lea.vmem %s1700_s15, 256  ;;  %p1702_p13 = scmp.lt.s32.totalorder %s313_s27, %s1700_s15 }
  0x9b   : > { %p1697_p11 = pnand %p1695_p9, %p2276_p0  ;;  %p1703_p2 = scmp.lt.s32.totalorder %s1701_s23, %s1694_s21 }
  0x9d   : > { %p1698_p4 = pneg %p1697_p11  ;;  %p1704_p7 = por %p1703_p2, %p1702_p13 }
  0x9f   : > { %p1705_p5 = pnand %p1704_p7, %p1698_p4 }
  0xa1   : > { %1708 = shalt.err (!%p1705_p5)
}
  0xa2   : > { %p2278_p12 = scmp.ne.s32.totalorder %s2269_s11, 0  ;;  %p2279_p3 = scmp.ne.s32.totalorder %s2262_s9, 0 }
  0xa3   : > { %s2070_s3 = sand.u32 (!%p2279_p3), 1, %s1775_s25   ;;  %p2280_p0 = scmp.ne.s32.totalorder (!%p2279_p3), %s2259_s30, 0 }
  0xa4   : > { %1482 = dma.hbm_to_vmem [thread:$0]  (!%p2278_p12), %s2046_s12, 128, %s313_s27, %s1966_s17  }
  0xa5   : > { %321 = sbr.rel (%p2279_p3) target bundleno = 1638 (0x666), region = 48  ;;  %s2073_s13 = sshll.u32 (!%p2279_p3), %s2070_s3, 3 }
  0xa6   : > { %s324_s24 = scalar_lea.sflag (!%p2279_p3), [#allocation4], %s2070_s3  ;;  %s327_s1 = scalar_lea.vmem (!%p2279_p3), [#allocation3], %s2073_s13 }
  0xac   : > { %1754 = dma.done.wait (%p2280_p0), %s324_s24, 128  }
  0xad   : > { %1756 = vsyncadd (%p2280_p0), %s324_s24, 4294967168  ;;  %s332_s9 = sand.u32 1, %s1864_s28   ;;  %s336_s17 = scalar_lea.vmem [#allocation6], %s2073_s13 }
  0xae   : > { %s333_s11 = scalar_lea.sflag [#allocation7], %s332_s9 }
  0xaf   : > { %1758 = dma.done.wait (%p2280_p0), %s333_s11, 256  }
  0xb0   : > { %1760 = vsyncadd (%p2280_p0), %s333_s11, 4294967040  ;;  %s345_s12 = scalar_lea.vmem [#allocation8], %s2073_s13  ;;  %p2281_p7 = scmp.eq.s32.totalorder %s1864_s28, 0 }
  0xb2   : > { %1762 = dma.done.wait (%p2281_p7), [#allocation10], 816   ;;  %p2282_p1 = pmov %p2281_p7 }
  0xb3   : > { %v1794_v0 = vmov 0.0   ;;  %vm1795_vm0 = vmmov 0   ;;  %v1539_v1 = vld [vmem:[#allocation9 + $0x10] sm:$0xff]   ;;  %v1540_v2 = vld [vmem:[#allocation9] sm:$0xff]   ;;  %v1541_v3 = vld [vmem:[#allocation9 + $0x18] sm:$0xff]   ;;  %vm424_vm1 = vcmask 261120  }
  0xb4   : > { %1764 = vsyncadd (%p2282_p1), [#allocation10], 4294966480  ;;  %1378 = vmatprep.subr.bf16.mxu1 %v1794_v0  ;;  %1370 = vmatprep.subr.bf16.mxu0 %v1794_v0  ;;  %v397_v4 = vld [vmem:[%s336_s17] sm:$0xff]  ;;  %v395_v6 = vld [vmem:[%s327_s1] sm:$0xff]  ;;  %vm607_vm2 = vcmask 64512   ;;  %s1796_s30 = smov 112  }
  0xb5   : > { %1382 = vmatprep.mubr.msk.bf16.mxu1 %vm1795_vm0, %v1794_v0  ;;  %1374 = vmatprep.mubr.msk.bf16.mxu0 %vm1795_vm0, %v1794_v0  ;;  %v1542_v5 = vld [vmem:[#allocation9 + $0x8] sm:$0xff]   ;;  %v398_v7 = vpack.c.bf16 %v397_v4, %v397_v4  ;;  %v396_v8 = vpack.c.bf16 %v395_v6, %v395_v6  ;;  %v1312_v9 = vld [vmem:[#allocation11 + $0x1] ss:$0 sm:$0xff]  ;;  %v1308_v10 = vld [vmem:[#allocation11] ss:$0 sm:$0xff]  ;;  %s1797_s20 = smov 120  }
  0xb6   : > { %1379 = vmatpush3.bf16.msra.mxu1 %v1539_v1  ;;  %1371 = vmatpush3.bf16.msra.mxu0 %v1540_v2  ;;  %s1798_s27 = smov 104   ;;  %v1543_v24 = vld [vmem:[#allocation9 + $0x20] sm:$0xff]   ;;  %v1544_v25 = vld [vmem:[#allocation9 + $0x28] sm:$0xff]   ;;  %v399_v26 = vld [vmem:[%s345_s12] sm:$0xff]  ;;  %vm669_vm3 = vcmask 1043456   ;;  %vm714_vm4 = vcmask 60416  }
  0xb7   : > { %1380 = vmatprep.subr.bf16.mxu1 %v1794_v0  ;;  %1372 = vmatprep.subr.bf16.mxu0 %v1794_v0  ;;  %v400_v27 = vpack.c.bf16 %v399_v26, %v399_v26  ;;  %v1316_v42 = vld [vmem:[#allocation11 + $0x2] ss:$0 sm:$0xff]  ;;  %s1799_s16 = smov 8   ;;  %s1800_s29 = smov 16   ;;  %vm836_vm5 = vcmask 126016   ;;  %vm955_vm6 = vcmask 191616  }
  0xb8   : > { %s1801_s21 = smov 24   ;;  %vm1074_vm7 = vcmask 257216   ;;  %s1336_s23 = sshll.u32 %s1864_s28, 7 }
  0xb9   : > { %s393_s24 = scalar_lea.vmem [#allocation12], %s2073_s13  ;;  %s2185_s17 = scalar_lea.hbm %s2237_s7, %s1336_s23 }
  0xba   : > { %1381 = vmatpush3.bf16.msra.mxu1 %v1541_v3  ;;  %1373 = vmatpush3.bf16.msra.mxu0 %v1542_v5  ;;  %s1158_s1 = sshll.u32 %s393_s24, 4  ;;  %s1145_s28 = scalar_lea.sflag [#allocation5], %s2070_s3  ;;  %s2187_s1 = int_to_ptr.vmem [resolvable:$true] %s1158_s1 }
  0xbb   : > { %1394 = vmatprep.subr.bf16.mxu1 %v1794_v0  ;;  %1386 = vmatprep.subr.bf16.mxu0 %v1794_v0  ;;  %s1709_s13 = scalar_lea.vmem %s2187_s1, 128  ;;  %p2283_p10 = scmp.ne.s32.totalorder %s2268_s19, 0 }
  0xbc   : > { %p1710_p6 = scmp.ne.s32.totalorder %s2187_s1, %s1709_s13  ;;  %s1802_s12 = smov [#allocation12]  }
  0xbd   : > { %1383 = vmatmul.mubr.msk.bf16.vlgmr.msra.gmra.mrb[0].mxu1 %vm424_vm1, %v398_v7  ;;  %1375 = vmatmul.mubr.msk.bf16.vlgmr.msra.gmra.mrb[0].mxu0 %vm424_vm1, %v396_v8 }
  0xbe   : > { %1396 = vmatprep.mubr.msk.bf16.mxu1 %vm1795_vm0, %v1794_v0  ;;  %1390 = vmatprep.mubr.msk.bf16.mxu0 %vm1795_vm0, %v1794_v0  ;;  %p1711_p8 = pnand %p1710_p6, %p2283_p10 }
  0xbf   : > { %1387 = vmatpush3.bf16.msra.mxu0 %v1543_v24 }
  0xc0   : > { %1388 = vmatprep.subr.bf16.mxu0 %v1794_v0  ;;  %p1712_p9 = pneg %p1711_p8 }
  0xc3   : > { %1389 = vmatpush3.bf16.msra.mxu0 %v1544_v25 }
  0xc4   : > { %1400 = vmatprep.subr.bf16.mxu0 %v1794_v0 }
  0xc6   : > { %1391 = vmatmul.mubr.msk.bf16.vlgmr.msra.gmra.mrb[4].mxu0 %vm424_vm1, %v400_v27 }
  0xc7   : > { %1402 = vmatprep.mubr.msk.bf16.mxu0 %vm1795_vm0, %v1794_v0 }
 0x190   : > { %v530_v11 = vpop.f32.mrb[0].mxu1  ;;  %v462_v14 = vpop.f32.mrb[0].mxu0 }
 0x191   : > { %v531_v12 = vadd.f32 %v1312_v9, %v530_v11  ;;  %v1384_v13 = vpop.f32.mrb[1].mxu1  ;;  %v463_v16 = vadd.f32 %v1308_v10, %v462_v14  ;;  %v1376_v17 = vpop.f32.mrb[1].mxu0 }
 0x192   : > { %v533_v15 = vpop.f32.mrb[2].mxu1  ;;  %v465_v20 = vpop.f32.mrb[2].mxu0 }
 0x193   : > { %v605_v18 = vpack.c.bf16 %v531_v12, %v531_v12  ;;  %v1385_v19 = vpop.f32.mrb[3].mxu1  ;;  %v1377_v21 = vpop.f32.mrb[3].mxu0  ;;  %v604_v22 = vpack.c.bf16 %v463_v16, %v463_v16 }
 0x195   : > { %840 = vrot.lane.b32.xlu1 %v605_v18, %s1796_s30  ;;  %720 = vrot.lane.b32.xlu0 %v605_v18, %s1797_s20  ;;  %v612_v23 = vsel %vm607_vm2, %v605_v18, 0 }
 0x196   : > { %1395 = vmatpush3.bf16.xpose.msra.mxu1 %v612_v23 }
 0x197   : > { %1406 = vmatprep.subr.bf16.mxu1 %v1794_v0 }
 0x199   : > { %838 = vrot.lane.b32.xlu1 %v604_v22, %s1796_s30  ;;  %717 = vrot.lane.b32.xlu0 %v604_v22, %s1797_s20  ;;  %v598_v43 = vpop.f32.mrb[4].mxu0 }
 0x19a   : > { %v599_v44 = vadd.f32 %v1316_v42, %v598_v43  ;;  %v1392_v45 = vpop.f32.mrb[5].mxu0 }
 0x19b   : > { %v601_v46 = vpop.f32.mrb[6].mxu0 }
 0x19c   : > { %v606_v47 = vpack.c.bf16 %v599_v44, %v599_v44  ;;  %v1393_v48 = vpop.f32.mrb[7].mxu0 }
 0x19d   : > { %957 = vrot.lane.b32.xlu1 %v604_v22, %s1798_s27  ;;  %959 = vrot.lane.b32.xlu0 %v605_v18, %s1798_s27 }
 0x19e   : > { %1397 = vmatmul.mubr.msk.bf16.vlgmr.msra.gmra.mrb[4].mxu1 %vm607_vm2, %v604_v22  ;;  %v671_v49 = vsel %vm669_vm3, %v606_v47, 0 }
 0x19f   : > { %1408 = vmatprep.mubr.msk.bf16.mxu1 %vm1795_vm0, %v1794_v0  ;;  %1401 = vmatpush3.bf16.msra.mxu0 %v671_v49 }
 0x1a0   : > { %1412 = vmatprep.subr.bf16.mxu0 %v1794_v0 }
 0x207   : > { %v721_v28 = vpop.permute.xlu0 %720  ;;  %v841_v30 = vpop.permute.xlu1 %840 }
 0x208   : > { %v726_v29 = vsel %vm607_vm2, %v721_v28, 0  ;;  %v846_v32 = vsel %vm607_vm2, %v841_v30, 0 }
 0x209   : > { %1407 = vmatpush3.bf16.xpose.msra.mxu1 %v726_v29 }
 0x20a   : > { %1418 = vmatprep.subr.bf16.mxu1 %v1794_v0 }
 0x20b   : > { %v718_v31 = vpop.permute.xlu0 %717  ;;  %v839_v34 = vpop.permute.xlu1 %838 }
 0x20f   : > { %v960_v33 = vpop.permute.xlu0 %959  ;;  %v958_v36 = vpop.permute.xlu1 %957 }
 0x210   : > { %1409 = vmatmul.mubr.msk.bf16.vlgmr.msra.gmra.mrb[8].mxu1 %vm607_vm2, %v718_v31  ;;  %v965_v35 = vsel %vm607_vm2, %v960_v33, 0 }
 0x211   : > { %1419 = vmatpush3.bf16.xpose.msra.mxu1 %v846_v32  ;;  %1420 = vmatprep.mubr.msk.bf16.mxu1 %vm1795_vm0, %v1794_v0 }
 0x212   : > { %1430 = vmatprep.subr.bf16.mxu1 %v1794_v0 }
 0x218   : > { %1421 = vmatmul.mubr.msk.bf16.vlgmr.msra.gmra.mrb[12].mxu1 %vm607_vm2, %v839_v34 }
 0x219   : > { %1431 = vmatpush3.bf16.xpose.msra.mxu1 %v965_v35  ;;  %1432 = vmatprep.mubr.msk.bf16.mxu1 %vm1795_vm0, %v1794_v0 }
 0x21a   : > { %1442 = vmatprep.subr.bf16.mxu1 %v1794_v0 }
 0x220   : > { %1433 = vmatmul.mubr.msk.bf16.vlgmr.msra.gmra.mrb[16].mxu1 %vm607_vm2, %v958_v36 }
 0x221   : > { %1446 = vmatprep.mubr.msk.bf16.mxu1 %vm1795_vm0, %v1794_v0 }
 0x271   : > { %v648_v37 = vpop.f32.mrb[4].mxu1 }
 0x272   : > { %v1398_v38 = vpop.f32.mrb[5].mxu1  ;;  %v654_v39 = vsel %vm607_vm2, %v648_v37, -inf }
 0x273   : > { %655 = vmax.xlane.f32.xlu0 %v654_v39  ;;  %v651_v40 = vpop.f32.mrb[6].mxu1 }
 0x274   : > { %v1399_v41 = vpop.f32.mrb[7].mxu1 }
 0x2e3   : > { %v762_v50 = vpop.f32.mrb[8].mxu1 }
 0x2e4   : > { %v1410_v51 = vpop.f32.mrb[9].mxu1  ;;  %v768_v52 = vsel %vm607_vm2, %v762_v50, -inf }
 0x2e5   : > { %769 = vmax.xlane.f32.xlu1 %v768_v52  ;;  %v765_v53 = vpop.f32.mrb[10].mxu1 }
 0x2e6   : > { %v1411_v54 = vpop.f32.mrb[11].mxu1 }
 0x2e7   : > { %v1545_v54 = vld [vmem:[%s2235_s5] sm:$0xff]  }
 0x2e8   : > { %1443 = vmatpush3.bf16.msra.mxu1 %v1545_v54 }
 0x2e9   : > { %1444 = vmatprep.subr.bf16.mxu1 %v1794_v0 }
 0x2eb   : > { %v882_v55 = vpop.f32.mrb[12].mxu1 }
 0x2ec   : > { %v1422_v56 = vpop.f32.mrb[13].mxu1  ;;  %v888_v57 = vsel %vm607_vm2, %v882_v55, -inf }
 0x2ed   : > { %889 = vmax.xlane.f32.xlu0 %v888_v57  ;;  %v885_v58 = vpop.f32.mrb[14].mxu1  ;;  %v1546_v56 = vld [vmem:[%s2235_s5 + $0x8] sm:$0xff]  }
 0x2ee   : > { %v1423_v59 = vpop.f32.mrb[15].mxu1  ;;  %1445 = vmatpush3.bf16.msra.mxu1 %v1546_v56 }
 0x2f3   : > { %v1001_v60 = vpop.f32.mrb[16].mxu1 }
 0x2f4   : > { %v1434_v61 = vpop.f32.mrb[17].mxu1  ;;  %v1007_v62 = vsel %vm607_vm2, %v1001_v60, -inf }
 0x2f5   : > { %1008 = vmax.xlane.f32.xlu0 %v1007_v62  ;;  %v1004_v63 = vpop.f32.mrb[18].mxu1 }
 0x2f6   : > { %v1435_v1 = vpop.f32.mrb[19].mxu1 }
 0x300   : > { %v656_v2 = vpop.xlane.xlu0 %655 }
 0x301   : > { %v657_v3 = vsub.f32 %v648_v37, %v656_v2 }
 0x303   : > { %v658_v4 = vmul.f32 1.442695, %v657_v3 }
 0x305   : > { %1547 = vpow2.f32 %v658_v4 }
 0x30f   : > { %v1548_v5 = vpop.eup %1547 }
 0x310   : > { %v660_v6 = vsel %vm607_vm2, %v1548_v5, 0.0 }
 0x311   : > { %661 = vadd.xlane.f32.xlu1 %v660_v6  ;;  %v1331_v6 = vld [vmem:[%s2236_s6] ss:$0 sm:$0xff] }
 0x322   : > { %781 = vrot.lane.b32.xlu1 %v606_v47, %s1797_s20 }
 0x372   : > { %v770_v7 = vpop.xlane.xlu1 %769 }
 0x373   : > { %v771_v8 = vsub.f32 %v762_v50, %v770_v7 }
 0x375   : > { %v772_v9 = vmul.f32 1.442695, %v771_v8 }
 0x377   : > { %1549 = vpow2.f32 %v772_v9 }
 0x37a   : > { %v890_v10 = vpop.xlane.xlu0 %889 }
 0x37b   : > { %v891_v11 = vsub.f32 %v882_v55, %v890_v10 }
 0x37d   : > { %v892_v12 = vmul.f32 1.442695, %v891_v11 }
 0x37f   : > { %1551 = vpow2.f32 %v892_v12 }
 0x381   : > { %v1550_v13 = vpop.eup %1549 }
 0x382   : > { %v1009_v14 = vpop.xlane.xlu0 %1008  ;;  %v774_v15 = vsel %vm607_vm2, %v1550_v13, 0.0 }
 0x383   : > { %v1010_v16 = vsub.f32 %v1001_v60, %v1009_v14  ;;  %775 = vadd.xlane.f32.xlu0 %v774_v15 }
 0x385   : > { %v1011_v17 = vmul.f32 1.442695, %v1010_v16 }
 0x387   : > { %1553 = vpow2.f32 %v1011_v17 }
 0x389   : > { %v1552_v18 = vpop.eup %1551 }
 0x38a   : > { %v894_v19 = vsel %vm607_vm2, %v1552_v18, 0.0 }
 0x38b   : > { %895 = vadd.xlane.f32.xlu1 %v894_v19 }
 0x391   : > { %v1554_v20 = vpop.eup %1553 }
 0x392   : > { %v1013_v21 = vsel %vm607_vm2, %v1554_v20, 0.0 }
 0x393   : > { %1014 = vadd.xlane.f32.xlu0 %v1013_v21 }
 0x39c   : > { %1019 = vrot.lane.b32.xlu1 %v606_v47, %s1798_s27 }
 0x39e   : > { %v662_v22 = vpop.xlane.xlu1 %661 }
 0x39f   : > { %1555 = vrcp.f32 %v662_v22 }
 0x3a2   : > { %v782_v24 = vpop.permute.xlu1 %781 }
 0x3a3   : > { %v787_v27 = vsel %vm669_vm3, %v782_v24, 0 }
 0x3a9   : > { %v1556_v23 = vpop.eup %1555  ;;  %900 = vrot.lane.b32.xlu0 %v606_v47, %s1796_s30  ;;  %s1713_s30 = sshll.u32 %s1802_s12, 4  ;;  %s1714_s30 = int_to_ptr.vmem [resolvable:$false] %s1713_s30 }
 0x3aa   : > { %v664_v25 = vmul.f32 %v1556_v23, %v1548_v5  ;;  %s1715_s20 = scalar_lea.vmem %s1714_s30, 256  ;;  %p1716_p11 = scmp.lt.s32.totalorder %s2187_s1, %s1714_s30 }
 0x3ab   : > { %p1717_p4 = scmp.lt.s32.totalorder %s1715_s20, %s1709_s13 }
 0x3ac   : > { %v665_v26 = vpack.c.bf16 %v664_v25, %v664_v25 }
 0x3ad   : > { %p1718_p13 = por %p1717_p4, %p1716_p11 }
 0x3ae   : > { %1403 = vmatmul.mubr.msk.bf16.vlgmr.msra.gmra.mrb[8].mxu0 %vm607_vm2, %v665_v26 }
 0x3af   : > { %1413 = vmatpush3.bf16.msra.mxu0 %v787_v27  ;;  %1414 = vmatprep.mubr.msk.bf16.mxu0 %vm1795_vm0, %v1794_v0  ;;  %p1719_p2 = pnand %p1718_p13, %p1712_p9 }
 0x3b0   : > { %1424 = vmatprep.subr.bf16.mxu0 %v1794_v0 }
 0x410   : > { %v776_v28 = vpop.xlane.xlu0 %775 }
 0x411   : > { %1557 = vrcp.f32 %v776_v28 }
 0x418   : > { %v896_v29 = vpop.xlane.xlu1 %895 }
 0x419   : > { %1559 = vrcp.f32 %v896_v29 }
 0x41b   : > { %v1558_v30 = vpop.eup %1557 }
 0x41c   : > { %v778_v31 = vmul.f32 %v1558_v30, %v1550_v13  ;;  %v1020_v38 = vpop.permute.xlu1 %1019 }
 0x41d   : > { %v1025_v40 = vsel %vm669_vm3, %v1020_v38, 0 }
 0x41e   : > { %v779_v32 = vpack.c.bf16 %v778_v31, %v778_v31 }
 0x420   : > { %v1015_v33 = vpop.xlane.xlu0 %1014  ;;  %1415 = vmatmul.mubr.msk.bf16.vlgmr.msra.gmra.mrb[12].mxu0 %vm607_vm2, %v779_v32 }
 0x421   : > { %1561 = vrcp.f32 %v1015_v33  ;;  %1426 = vmatprep.mubr.msk.bf16.mxu0 %vm1795_vm0, %v1794_v0 }
 0x423   : > { %v1560_v34 = vpop.eup %1559 }
 0x424   : > { %v898_v35 = vmul.f32 %v1560_v34, %v1552_v18  ;;  %v901_v36 = vpop.permute.xlu0 %900 }
 0x425   : > { %v906_v37 = vsel %vm669_vm3, %v901_v36, 0 }
 0x426   : > { %1425 = vmatpush3.bf16.msra.mxu0 %v906_v37  ;;  %v899_v39 = vpack.c.bf16 %v898_v35, %v898_v35 }
 0x427   : > { %1436 = vmatprep.subr.bf16.mxu0 %v1794_v0 }
 0x429   : > { %1427 = vmatmul.mubr.msk.bf16.vlgmr.msra.gmra.mrb[16].mxu0 %vm607_vm2, %v899_v39 }
 0x42a   : > { %1437 = vmatpush3.bf16.msra.mxu0 %v1025_v40  ;;  %1438 = vmatprep.mubr.msk.bf16.mxu0 %vm1795_vm0, %v1794_v0 }
 0x42b   : > { %v1562_v41 = vpop.eup %1561 }
 0x42c   : > { %v1017_v42 = vmul.f32 %v1562_v41, %v1554_v20 }
 0x42e   : > { %v1018_v43 = vpack.c.bf16 %v1017_v42, %v1017_v42 }
 0x431   : > { %1439 = vmatmul.mubr.msk.bf16.vlgmr.msra.gmra.mrb[20].mxu0 %vm607_vm2, %v1018_v43 }
 0x481   : > { %v707_v44 = vpop.f32.mrb[8].mxu0 }
 0x482   : > { %v713_v45 = vpack.c.bf16 %v707_v44, %v707_v44  ;;  %v1404_v46 = vpop.f32.mrb[9].mxu0 }
 0x483   : > { %v710_v47 = vpop.f32.mrb[10].mxu0 }
 0x484   : > { %715 = vst.msk [vmem:[#allocation2] sm:$0xf] %vm714_vm4, %v713_v45  ;;  %v1405_v48 = vpop.f32.mrb[11].mxu0 }
 0x4f3   : > { %v823_v49 = vpop.f32.mrb[12].mxu0 }
 0x4f4   : > { %v1339_v50 = vpack.c.bf16 %v823_v49, %v823_v49  ;;  %v1416_v51 = vpop.f32.mrb[13].mxu0 }
 0x4f5   : > { %v826_v52 = vpop.f32.mrb[14].mxu0 }
 0x4f6   : > { %833 = vrot.lane.b32.xlu1 %v1339_v50, %s1799_s16  ;;  %v1417_v53 = vpop.f32.mrb[15].mxu0 }
 0x4fc   : > { %v942_v55 = vpop.f32.mrb[16].mxu0 }
 0x4fd   : > { %v1340_v57 = vpack.c.bf16 %v942_v55, %v942_v55  ;;  %v1428_v58 = vpop.f32.mrb[17].mxu0 }
 0x4fe   : > { %v945_v59 = vpop.f32.mrb[18].mxu0 }
 0x4ff   : > { %952 = vrot.lane.b32.xlu0 %v1340_v57, %s1800_s29  ;;  %v1429_v60 = vpop.f32.mrb[19].mxu0 }
 0x504   : > { %v1061_v61 = vpop.f32.mrb[20].mxu0 }
 0x505   : > { %v1341_v62 = vpack.c.bf16 %v1061_v61, %v1061_v61  ;;  %v1440_v63 = vpop.f32.mrb[21].mxu0 }
 0x506   : > { %v1064_v1 = vpop.f32.mrb[22].mxu0 }
 0x507   : > { %1071 = vrot.lane.b32.xlu1 %v1341_v62, %s1801_s21  ;;  %v1441_v2 = vpop.f32.mrb[23].mxu0 }
 0x568   : > { %v834_v3 = vpop.permute.xlu1 %833 }
 0x569   : > { %837 = vst.msk [vmem:[#allocation2] sm:$0xf] %vm836_vm5, %v834_v3 }
 0x571   : > { %v953_v4 = vpop.permute.xlu0 %952 }
 0x572   : > { %956 = vst.msk [vmem:[#allocation2] sm:$0xf] %vm955_vm6, %v953_v4 }
 0x579   : > { %v1072_v0 = vpop.permute.xlu1 %1071 }
 0x57a   : > { %1075 = vst.msk [vmem:[#allocation2] sm:$0xf] %vm1074_vm7, %v1072_v0 }
 0x581   : > { %v1076_v5 = vld [vmem:[#allocation2] sm:$0xf] }
 0x582   : > { %1447 = vmatmul.mubr.msk.bf16.vlgmr.msra.gmra.mrb[20].mxu1 %vm424_vm1, %v1076_v5 }
 0x655   : > { %v1137_v7 = vpop.f32.mrb[20].mxu1 }
 0x656   : > { %v1138_v8 = vadd.f32 %v1331_v6, %v1137_v7  ;;  %v1448_v9 = vpop.f32.mrb[21].mxu1 }
 0x657   : > { %v1140_v10 = vpop.f32.mrb[22].mxu1 }
 0x658   : > { %v1449_v11 = vpop.f32.mrb[23].mxu1  ;;  %1143 = vst.msk [vmem:[%s393_s24] sm:$0xff] %vm424_vm1, %v1138_v8 }
 0x659   : > { %1722 = shalt.err (!%p1719_p2)
}
 0x65a   : > { %s1723_s3 = scalar_lea.hbm %s2185_s17, 128  ;;  %s1727_s18 = scalar_lea.hbm %s2237_s7, 256 }
 0x65b   : > { %p1724_p5 = scmp.ne.s32.totalorder %s2185_s17, %s1723_s3  ;;  %p1728_p0 = scmp.lt.u32.totalorder %s2185_s17, %s2237_s7 }
 0x65c   : > { %p1729_p7 = scmp.lt.u32.totalorder %s1727_s18, %s1723_s3  ;;  %p1731_p6 = scmp.lt.u32.totalorder %s1723_s3, %s2185_s17 }
 0x65d   : > { %p1725_p12 = pnand %p1724_p5, %p2283_p10 }
 0x65e   : > { %p1730_p1 = por %p1729_p7, %p1728_p0 }
 0x65f   : > { %p1726_p3 = pneg %p1725_p12 }
 0x660   : > { %p1732_p8 = por %p1731_p6, %p1730_p1 }
 0x662   : > { %p1733_p9 = pnand %p1732_p8, %p1726_p3 }
 0x664   : > { %1736 = shalt.err (!%p1733_p9)
}
 0x665   : > { %1464 = dma.vmem_to_hbm [thread:$0]  (%p2283_p10), %s2187_s1, 128, %s2185_s17, %s1145_s28  }
 0x666 PF: > { %s2284_s14 = sld [smem:[#allocation17_spill]]  ;;  %s2285_s29 = sld [smem:[#allocation19_spill]] }
 0x667   : > { %s2286_s21 = sld [smem:[#allocation18_spill]] }
 0x66c   : > { %s1170_s22 = sand.u32 1, %s2284_s14   ;;  %p2287_p11 = scmp.ne.s32.totalorder %s2285_s29, 0 }
 0x66d   : > { %p2288_p4 = scmp.ge.s32.totalorder %s2286_s21, 2  ;;  %s1171_s15 = scalar_lea.sflag [#allocation5], %s1170_s22 }
 0x66f   : > { %p1484_p13 = pnand %p2288_p4, %p2287_p11 }
 0x671   : > { %1766 = dma.done.wait (!%p1484_p13), %s1171_s15, 128  }
 0x672   : > { %1768 = vsyncadd (!%p1484_p13), %s1171_s15, 4294967168  ;;  %s2289_s27 = sld [smem:[#allocation20_spill]]  ;;  %s2290_s23 = sld [smem:[#allocation21_spill]] }
 0x673   : > { %s2291_s24 = smov %s1775_s25  ;;  %s2292_s25 = smov %s1779_s26 }
 0x678   : > { %p24_p2 = scmp.ge.s32.totalorder %s2289_s27, 4   ;;  %s2293_s26 = smov %s2290_s23 }
 0x67a   :  { %26 = sbr.rel (!%p24_p2) target bundleno = 11 (0xb), region = 129 }
 0x681   :  { %1176 = vsyncpa [#allocation4], 1 }
 0x682   :  { %1178 = vsyncpa [#allocation4 + $0x1], 1 }
 0x683   :  { %1179 = vsyncpa [#allocation7], 1 }
 0x684   :  { %1181 = vsyncpa [#allocation7 + $0x1], 1 }
 0x685   :  { %1182 = vsyncpa [#allocation10], 1 }
 0x686   :  { %1183 = vsyncpa [#allocation5], 1 }
 0x687   :  { %1185 = vsyncpa [#allocation5 + $0x1], 1 }

</bundles_post_ra>
